<compile_context>
chip_gen: v7x
topology: tpu7x:2x2x1
jax: 0.10.0
libtpu: 0.0.40
codegen_flags: <defaults>
</compile_context>

<pallas_src>
import functools

import jax
import jax.numpy as jnp
from jax.experimental import pallas as pl
from jax.experimental.pallas import tpu as pltpu


def _identity_dma_kernel(x_hbm, o_hbm, sems, *, n_chunks, rows_per_chunk):
    """Copy x_hbm -> o_hbm with n_chunks concurrent HBM->HBM DMAs."""

    def _chunk_copy(i):
        rows = pl.ds(i * rows_per_chunk, rows_per_chunk)
        return pltpu.make_async_copy(
            x_hbm.at[rows, :], o_hbm.at[rows, :], sems.at[i]
        )

    # Start every chunk first so the DMA engines run concurrently ...
    for i in range(n_chunks):
        _chunk_copy(i).start()
    # ... then wait for all of them.
    for i in range(n_chunks):
        _chunk_copy(i).wait()


def identity_forward(x):
    """Identity.forward(inputs) -> inputs, via a Pallas HBM->HBM DMA kernel."""
    orig_shape = x.shape
    orig_dtype = x.dtype

    if x.size == 0:
        # Nothing to copy.
        return x

    total = x.size
    itemsize = jnp.dtype(orig_dtype).itemsize
    # Sublane packing per dtype width: 8 rows for 32-bit, 16 for 16-bit,
    # 32 for 8-bit types.
    sublane = {4: 8, 2: 16, 1: 32}.get(itemsize, 8)

    # --- lane-dense flatten: last dim a big multiple of 128 when possible ---
    lanes = None
    for cand in (4096, 2048, 1024, 512, 256, 128):
        if total % cand == 0 and (total // cand) % sublane == 0:
            lanes = cand
            break
    if lanes is None:
        for cand in (4096, 2048, 1024, 512, 256, 128):
            if total % cand == 0:
                lanes = cand
                break

    if lanes is not None:
        R, C = total // lanes, lanes
    elif x.ndim >= 2:
        # Fallback: keep the original trailing dim (full-extent lane dim).
        C = orig_shape[-1]
        R = total // C
    else:
        R, C = 1, total

    x2 = x.reshape(R, C)

    # --- chunking: a few concurrent DMAs for big arrays, one for small ---
    total_bytes = total * itemsize
    MAX_CHUNKS = 8
    MIN_CHUNK_BYTES = 1 << 20  # below ~1 MiB a single DMA is already optimal
    n_chunks = 1
    for n in range(MAX_CHUNKS, 1, -1):
        if R % n == 0 and total_bytes // n >= MIN_CHUNK_BYTES:
            n_chunks = n
            break
    rows_per_chunk = R // n_chunks

    kernel = functools.partial(
        _identity_dma_kernel,
        n_chunks=n_chunks,
        rows_per_chunk=rows_per_chunk,
    )

    out2 = pl.pallas_call(
        kernel,
        out_shape=jax.ShapeDtypeStruct((R, C), orig_dtype),
        in_specs=[pl.BlockSpec(memory_space=pl.ANY)],
        out_specs=pl.BlockSpec(memory_space=pl.ANY),
        scratch_shapes=[pltpu.SemaphoreType.DMA((n_chunks,))],
    )(x2)

    return out2.reshape(orig_shape)


if __name__ == "__main__":
    key = jax.random.PRNGKey(0)
    # Small NCHW input, consistent with a conv-style NAS candidate op.
    x = jax.random.normal(key, (2, 4, 16, 16), dtype=jnp.float32)

    y = identity_forward(x)
    y = jax.block_until_ready(y)

    assert y.shape == x.shape
    assert y.dtype == x.dtype
    assert bool(jnp.all(y == x))

    print("KERNEL_OK")
</pallas_src>

<mosaic_0001>
module attributes {stable_mosaic.version = 11 : i64} {
  func.func @_identity_dma_kernel(%arg0: memref<8x256xf32, #tpu.memory_space<any>>, %arg1: memref<8x256xf32, #tpu.memory_space<any>>, %arg2: memref<1x!tpu.dma_semaphore, #tpu.memory_space<semaphore_mem>>) attributes {dimension_semantics = [], scalar_prefetch = 0 : i64, scratch_operands = 1 : i64, tpu.core_type = #tpu.core_type<tc>} {
    %c0_i32 = arith.constant 0 : i32
    %c0_i32_0 = arith.constant 0 : i32
    %c0_i32_1 = arith.constant 0 : i32
    %0 = tpu.memref_slice %arg0[%c0_i32_0, %c0_i32_1] : memref<8x256xf32, #tpu.memory_space<any>> -> memref<8x256xf32, #tpu.memory_space<any>>
    %c0_i32_2 = arith.constant 0 : i32
    %c0_i32_3 = arith.constant 0 : i32
    %1 = tpu.memref_slice %arg1[%c0_i32_2, %c0_i32_3] : memref<8x256xf32, #tpu.memory_space<any>> -> memref<8x256xf32, #tpu.memory_space<any>>
    %2 = tpu.memref_slice %arg2[%c0_i32] : memref<1x!tpu.dma_semaphore, #tpu.memory_space<semaphore_mem>> -> memref<1x!tpu.dma_semaphore, #tpu.memory_space<semaphore_mem>>
    %3 = tpu.memref_squeeze %2 : memref<1x!tpu.dma_semaphore, #tpu.memory_space<semaphore_mem>> -> memref<!tpu.dma_semaphore, #tpu.memory_space<semaphore_mem>>
    tpu.enqueue_dma source(%0 : memref<8x256xf32, #tpu.memory_space<any>>) target(%1 : memref<8x256xf32, #tpu.memory_space<any>>) target_semaphore(%3 : memref<!tpu.dma_semaphore, #tpu.memory_space<semaphore_mem>>)
    %c0_i32_4 = arith.constant 0 : i32
    %c0_i32_5 = arith.constant 0 : i32
    %c0_i32_6 = arith.constant 0 : i32
    %4 = tpu.memref_slice %arg0[%c0_i32_5, %c0_i32_6] : memref<8x256xf32, #tpu.memory_space<any>> -> memref<8x256xf32, #tpu.memory_space<any>>
    %c0_i32_7 = arith.constant 0 : i32
    %c0_i32_8 = arith.constant 0 : i32
    %5 = tpu.memref_slice %arg1[%c0_i32_7, %c0_i32_8] : memref<8x256xf32, #tpu.memory_space<any>> -> memref<8x256xf32, #tpu.memory_space<any>>
    %6 = tpu.memref_slice %arg2[%c0_i32_4] : memref<1x!tpu.dma_semaphore, #tpu.memory_space<semaphore_mem>> -> memref<1x!tpu.dma_semaphore, #tpu.memory_space<semaphore_mem>>
    %7 = tpu.memref_squeeze %6 : memref<1x!tpu.dma_semaphore, #tpu.memory_space<semaphore_mem>> -> memref<!tpu.dma_semaphore, #tpu.memory_space<semaphore_mem>>
    tpu.wait_dma2 semaphore(%7 : memref<!tpu.dma_semaphore, #tpu.memory_space<semaphore_mem>>) src(%4 : memref<8x256xf32, #tpu.memory_space<any>>) dst(%5 : memref<8x256xf32, #tpu.memory_space<any>>)
    return
  }
}

</mosaic_0001>

<bundles_post_ra>
// kernel: tpu_custom_call.1
= control target key start
LH: loop header
LB: loop body
LE: loop exit
PB: predicated region body
PF: predicated region fallthrough
CT: control target
= control target key end

     0   :  { %s35_s6 = smov [#allocation2]   ;;  %s36_s7 = smov [#allocation3]   ;;  %s54_s0 = inlined_call_operand.hbm [shape: f32[8,256], index: 0, kind: input, shape index: {}]   ;;  %s55_s1 = inlined_call_operand.hbm [shape: f32[8,256], index: 1, kind: output, shape index: {}]  }
   0x1   :  { %s37_s8 = smov 0  }
   0x2   :  { %18 = dma.general %s54_s0, 256, %s55_s1, %s35_s6, %s36_s7, [#allocation4], %s37_s8, 0  }
   0x3   :  { %33 = dma.done.wait [#allocation2], 256 }
   0x4   :  { %34 = vsyncadd [#allocation2], 4294967040 }
   0x5   :  { %23 = vsyncmov [#allocation2] }
   0x8   :  { %s24_s13 = vpop.sfrf %23 }
   0x9   :  { %p29_p0 = scmp.ne.s32.totalorder %s24_s13, 0 }
   0xb   :  { %28 = shalt.err (%p29_p0)  }

</bundles_post_ra>
